<compile_context>
chip_gen: v6e
topology: v6e:2x2x1
jax: 0.10.0
libtpu: 0.0.40
codegen_flags: <defaults>
</compile_context>

<pallas_src>
import jax
import jax.numpy as jnp
from jax.experimental import pallas as pl
from jax.experimental.pallas import tpu as pltpu

LANE = 128  # TPU lane width


def _mnist_mlp_kernel(x_ref, w1_ref, b1_ref, w2_ref, b2_ref, w3_ref, b3_ref, o_ref):
    # fc1 + ReLU   (bf16 x bf16 -> f32 accumulate)
    h1 = jnp.dot(x_ref[...], w1_ref[...], preferred_element_type=jnp.float32)
    h1 = jnp.maximum(h1 + b1_ref[...], 0.0)
    # dropout (eval mode) -> identity
    # fc2 + ReLU   (padded hidden2 columns have zero weight/bias -> stay 0)
    h2 = jnp.dot(h1.astype(jnp.bfloat16), w2_ref[...],
                 preferred_element_type=jnp.float32)
    h2 = jnp.maximum(h2 + b2_ref[...], 0.0)
    # dropout (eval mode) -> identity
    # fc3 (logits); padded class columns carry a -1e30 bias so exp() -> 0 below
    logits = jnp.dot(h2.astype(jnp.bfloat16), w3_ref[...],
                     preferred_element_type=jnp.float32) + b3_ref[...]
    # log_softmax over dim=1 (numerically stable, f32)
    m = jnp.max(logits, axis=1, keepdims=True)
    lse = m + jnp.log(jnp.sum(jnp.exp(logits - m), axis=1, keepdims=True))
    o_ref[...] = (logits - lse).astype(o_ref.dtype)


def _round_up(n, m):
    return ((n + m - 1) // m) * m


def mnist_net_forward(x, params, *, block_batch=None):
    """x: [B, ...] (flattened to [B, 784]); params: dict of w1,b1,w2,b2,w3,b3."""
    if x.ndim > 2:
        x = x.reshape(x.shape[0], -1)
    B, D = x.shape

    H1 = params["w1"].shape[1]
    H2 = params["w2"].shape[1]
    num_classes = params["w3"].shape[1]

    # Lane-pad hidden2 and class dims to 128 for dense vregs / unmasked stores.
    H2p = _round_up(max(H2, LANE), LANE)
    Cp = _round_up(max(num_classes, LANE), LANE)

    w1 = params["w1"].astype(jnp.bfloat16)
    b1 = params["b1"].reshape(1, -1).astype(jnp.float32)

    w2 = jnp.zeros((H1, H2p), jnp.bfloat16).at[:, :H2].set(
        params["w2"].astype(jnp.bfloat16))
    b2 = jnp.zeros((1, H2p), jnp.float32).at[0, :H2].set(
        params["b2"].astype(jnp.float32))

    w3 = jnp.zeros((H2p, Cp), jnp.bfloat16).at[:H2, :num_classes].set(
        params["w3"].astype(jnp.bfloat16))
    # Padded class columns get a huge negative bias -> exp() == 0 in the LSE,
    # so the log_softmax over the real 10 classes is unaffected.
    b3 = jnp.full((1, Cp), -1e30, jnp.float32).at[0, :num_classes].set(
        params["b3"].astype(jnp.float32))

    # Batch tile: multiple of 8 (sublane granularity), capped at 512 so
    # double-buffered x tiles + resident weights stay far under v7x's VMEM.
    if block_batch is None:
        TB = min(512, _round_up(max(B, 8), 8))
    else:
        TB = block_batch
    Bp = _round_up(B, TB)

    xb = x.astype(jnp.bfloat16)
    if Bp != B:
        xb = jnp.zeros((Bp, D), jnp.bfloat16).at[:B].set(xb)

    grid = (Bp // TB,)

    # Weights/biases: constant block index -> stay resident in VMEM across steps.
    resident = lambda a: pl.BlockSpec(a.shape, lambda i: (0, 0))

    out = pl.pallas_call(
        _mnist_mlp_kernel,
        out_shape=jax.ShapeDtypeStruct((Bp, Cp), jnp.float32),
        grid=grid,
        in_specs=[
            pl.BlockSpec((TB, D), lambda i: (i, 0)),      # x: tiled over batch
            resident(w1), resident(b1),
            resident(w2), resident(b2),
            resident(w3), resident(b3),
        ],
        out_specs=pl.BlockSpec((TB, Cp), lambda i: (i, 0)),
        compiler_params=pltpu.CompilerParams(
            dimension_semantics=("parallel",),            # megacore on v7x
            vmem_limit_bytes=8 << 20,
        ),
    )(xb, w1, b1, w2, b2, w3, b3)

    return out[:B, :num_classes]


def init_params(key, input_size=784, hidden1=128, hidden2=64, num_classes=10):
    """Deterministic init mirroring nn.Linear's Kaiming-uniform-ish bounds."""
    ks = jax.random.split(key, 6)

    def linear(kw, kb, fan_in, fan_out):
        bound = 1.0 / (fan_in ** 0.5)
        w = jax.random.uniform(kw, (fan_in, fan_out), jnp.float32, -bound, bound)
        b = jax.random.uniform(kb, (fan_out,), jnp.float32, -bound, bound)
        return w, b

    w1, b1 = linear(ks[0], ks[1], input_size, hidden1)
    w2, b2 = linear(ks[2], ks[3], hidden1, hidden2)
    w3, b3 = linear(ks[4], ks[5], hidden2, num_classes)
    return {"w1": w1, "b1": b1, "w2": w2, "b2": b2, "w3": w3, "b3": b3}


if __name__ == "__main__":
    key = jax.random.PRNGKey(0)
    k_params, k_x = jax.random.split(key)

    params = init_params(k_params)
    # MNIST-like input: NCHW [batch=32, 1, 28, 28]; wrapper flattens to [32, 784].
    x = jax.random.normal(k_x, (32, 1, 28, 28), dtype=jnp.float32)

    # Single-step grid (default TB covers the whole batch).
    out = jax.block_until_ready(mnist_net_forward(x, params))
    # Multi-step grid (4 batch tiles of 8) to exercise the pipelined path.
    out_tiled = jax.block_until_ready(mnist_net_forward(x, params, block_batch=8))

    assert out.shape == (32, 10)
    assert out_tiled.shape == (32, 10)
    # sanity: log_softmax rows should exp-sum to 1
    row_sums = jnp.sum(jnp.exp(out), axis=1)
    assert bool(jnp.all(jnp.abs(row_sums - 1.0) < 1e-4))
    # tiling must not change per-row math
    assert bool(jnp.max(jnp.abs(out - out_tiled)) < 1e-4)

    print("KERNEL_OK")
</pallas_src>

<mosaic_0001>
module attributes {stable_mosaic.version = 11 : i64} {
  func.func @_mnist_mlp_kernel(%arg0: i32, %arg1: memref<32x784xbf16, #tpu.memory_space<vmem>>, %arg2: memref<784x128xbf16, #tpu.memory_space<vmem>>, %arg3: memref<1x128xf32, #tpu.memory_space<vmem>>, %arg4: memref<128x128xbf16, #tpu.memory_space<vmem>>, %arg5: memref<1x128xf32, #tpu.memory_space<vmem>>, %arg6: memref<128x128xbf16, #tpu.memory_space<vmem>>, %arg7: memref<1x128xf32, #tpu.memory_space<vmem>>, %arg8: memref<32x128xf32, #tpu.memory_space<vmem>>) attributes {dimension_semantics = [#tpu.dimension_semantics<parallel>], iteration_bounds = array<i64: 1>, scalar_prefetch = 0 : i64, scratch_operands = 0 : i64, tpu.core_type = #tpu.core_type<tc>, window_params = [{transform_indices = @transform_0, window_bounds = array<i64: 32, 784>}, {pipeline_mode = #tpu.pipeline_mode<synchronous>, transform_indices = @transform_1, window_bounds = array<i64: 784, 128>}, {pipeline_mode = #tpu.pipeline_mode<synchronous>, transform_indices = @transform_2, window_bounds = array<i64: 1, 128>}, {pipeline_mode = #tpu.pipeline_mode<synchronous>, transform_indices = @transform_3, window_bounds = array<i64: 128, 128>}, {pipeline_mode = #tpu.pipeline_mode<synchronous>, transform_indices = @transform_4, window_bounds = array<i64: 1, 128>}, {pipeline_mode = #tpu.pipeline_mode<synchronous>, transform_indices = @transform_5, window_bounds = array<i64: 128, 128>}, {pipeline_mode = #tpu.pipeline_mode<synchronous>, transform_indices = @transform_6, window_bounds = array<i64: 1, 128>}, {transform_indices = @transform_7, window_bounds = array<i64: 32, 128>}]} {
    %c0 = arith.constant 0 : index
    %c0_0 = arith.constant 0 : index
    %0 = vector.load %arg1[%c0, %c0_0] : memref<32x784xbf16, #tpu.memory_space<vmem>>, vector<32x784xbf16>
    %c0_1 = arith.constant 0 : index
    %c0_2 = arith.constant 0 : index
    %1 = vector.load %arg2[%c0_1, %c0_2] : memref<784x128xbf16, #tpu.memory_space<vmem>>, vector<784x128xbf16>
    %cst = arith.constant dense<0.000000e+00> : vector<32x128xf32>
    %2 = tpu.matmul %0, %1, %cst {dimension_numbers = #tpu.dot_dimension_numbers<[1], [0], [0], [1], [0, 0, 1, 1], [], []>} : vector<32x784xbf16>, vector<784x128xbf16>, vector<32x128xf32> -> vector<32x128xf32>
    %c0_3 = arith.constant 0 : index
    %c0_4 = arith.constant 0 : index
    %3 = vector.load %arg3[%c0_3, %c0_4] : memref<1x128xf32, #tpu.memory_space<vmem>>, vector<1x128xf32>
    %4 = vector.broadcast %3 : vector<1x128xf32> to vector<32x128xf32>
    %5 = arith.addf %2, %4 : vector<32x128xf32>
    %cst_5 = arith.constant 0.000000e+00 : f32
    %6 = vector.broadcast %cst_5 : f32 to vector<32x128xf32>
    %7 = arith.maximumf %5, %6 : vector<32x128xf32>
    %8 = arith.truncf %7 : vector<32x128xf32> to vector<32x128xbf16>
    %c0_6 = arith.constant 0 : index
    %c0_7 = arith.constant 0 : index
    %9 = vector.load %arg4[%c0_6, %c0_7] : memref<128x128xbf16, #tpu.memory_space<vmem>>, vector<128x128xbf16>
    %cst_8 = arith.constant dense<0.000000e+00> : vector<32x128xf32>
    %10 = tpu.matmul %8, %9, %cst_8 {dimension_numbers = #tpu.dot_dimension_numbers<[1], [0], [0], [1], [0, 0, 1, 1], [], []>} : vector<32x128xbf16>, vector<128x128xbf16>, vector<32x128xf32> -> vector<32x128xf32>
    %c0_9 = arith.constant 0 : index
    %c0_10 = arith.constant 0 : index
    %11 = vector.load %arg5[%c0_9, %c0_10] : memref<1x128xf32, #tpu.memory_space<vmem>>, vector<1x128xf32>
    %12 = vector.broadcast %11 : vector<1x128xf32> to vector<32x128xf32>
    %13 = arith.addf %10, %12 : vector<32x128xf32>
    %cst_11 = arith.constant 0.000000e+00 : f32
    %14 = vector.broadcast %cst_11 : f32 to vector<32x128xf32>
    %15 = arith.maximumf %13, %14 : vector<32x128xf32>
    %16 = arith.truncf %15 : vector<32x128xf32> to vector<32x128xbf16>
    %c0_12 = arith.constant 0 : index
    %c0_13 = arith.constant 0 : index
    %17 = vector.load %arg6[%c0_12, %c0_13] : memref<128x128xbf16, #tpu.memory_space<vmem>>, vector<128x128xbf16>
    %cst_14 = arith.constant dense<0.000000e+00> : vector<32x128xf32>
    %18 = tpu.matmul %16, %17, %cst_14 {dimension_numbers = #tpu.dot_dimension_numbers<[1], [0], [0], [1], [0, 0, 1, 1], [], []>} : vector<32x128xbf16>, vector<128x128xbf16>, vector<32x128xf32> -> vector<32x128xf32>
    %c0_15 = arith.constant 0 : index
    %c0_16 = arith.constant 0 : index
    %19 = vector.load %arg7[%c0_15, %c0_16] : memref<1x128xf32, #tpu.memory_space<vmem>>, vector<1x128xf32>
    %20 = vector.broadcast %19 : vector<1x128xf32> to vector<32x128xf32>
    %21 = arith.addf %18, %20 : vector<32x128xf32>
    %cst_17 = arith.constant dense<0xFF800000> : vector<32xf32>
    %22 = vector.multi_reduction <maximumf>, %21, %cst_17 [1] : vector<32x128xf32> to vector<32xf32>
    %23 = vector.shape_cast %22 : vector<32xf32> to vector<32x1xf32>
    %24 = vector.broadcast %23 : vector<32x1xf32> to vector<32x128xf32>
    %25 = arith.subf %21, %24 : vector<32x128xf32>
    %26 = math.exp %25 : vector<32x128xf32>
    %cst_18 = arith.constant dense<0.000000e+00> : vector<32xf32>
    %27 = vector.multi_reduction <add>, %26, %cst_18 [1] : vector<32x128xf32> to vector<32xf32>
    %28 = vector.shape_cast %27 : vector<32xf32> to vector<32x1xf32>
    %29 = math.log %28 : vector<32x1xf32>
    %30 = arith.addf %23, %29 : vector<32x1xf32>
    %31 = vector.broadcast %30 : vector<32x1xf32> to vector<32x128xf32>
    %32 = arith.subf %21, %31 : vector<32x128xf32>
    %c0_19 = arith.constant 0 : index
    %c0_20 = arith.constant 0 : index
    %33 = vector.load %arg8[%c0_19, %c0_20] : memref<32x128xf32, #tpu.memory_space<vmem>>, vector<32x128xf32>
    tpu.vector_store %arg8[%c0_19, %c0_20], %32 {strides = array<i32>} : memref<32x128xf32, #tpu.memory_space<vmem>>, vector<32x128xf32>,
    return
  }
  func.func @transform_0(%arg0: i32) -> (i32, i32) {
    %c0_i32 = arith.constant 0 : i32
    %c0_i32_0 = arith.constant 0 : i32
    return %arg0, %c0_i32 : i32, i32
  }
  func.func @transform_1(%arg0: i32) -> (i32, i32) {
    %c0_i32 = arith.constant 0 : i32
    %c0_i32_0 = arith.constant 0 : i32
    %c0_i32_1 = arith.constant 0 : i32
    return %c0_i32, %c0_i32_0 : i32, i32
  }
  func.func @transform_2(%arg0: i32) -> (i32, i32) {
    %c0_i32 = arith.constant 0 : i32
    %c0_i32_0 = arith.constant 0 : i32
    %c0_i32_1 = arith.constant 0 : i32
    return %c0_i32, %c0_i32_0 : i32, i32
  }
  func.func @transform_3(%arg0: i32) -> (i32, i32) {
    %c0_i32 = arith.constant 0 : i32
    %c0_i32_0 = arith.constant 0 : i32
    %c0_i32_1 = arith.constant 0 : i32
    return %c0_i32, %c0_i32_0 : i32, i32
  }
  func.func @transform_4(%arg0: i32) -> (i32, i32) {
    %c0_i32 = arith.constant 0 : i32
    %c0_i32_0 = arith.constant 0 : i32
    %c0_i32_1 = arith.constant 0 : i32
    return %c0_i32, %c0_i32_0 : i32, i32
  }
  func.func @transform_5(%arg0: i32) -> (i32, i32) {
    %c0_i32 = arith.constant 0 : i32
    %c0_i32_0 = arith.constant 0 : i32
    %c0_i32_1 = arith.constant 0 : i32
    return %c0_i32, %c0_i32_0 : i32, i32
  }
  func.func @transform_6(%arg0: i32) -> (i32, i32) {
    %c0_i32 = arith.constant 0 : i32
    %c0_i32_0 = arith.constant 0 : i32
    %c0_i32_1 = arith.constant 0 : i32
    return %c0_i32, %c0_i32_0 : i32, i32
  }
  func.func @transform_7(%arg0: i32) -> (i32, i32) {
    %c0_i32 = arith.constant 0 : i32
    %c0_i32_0 = arith.constant 0 : i32
    return %arg0, %c0_i32 : i32, i32
  }
}

</mosaic_0001>

<bundles_post_ra>
// kernel: tpu_custom_call.1
= control target key start
LH: loop header
LB: loop body
LE: loop exit
PB: predicated region body
PF: predicated region fallthrough
CT: control target
= control target key end

     0   :  { %12 = vsyncpa [#allocation3], 0  ;;  %s1631_s0 = inlined_call_operand.hbm [shape: bf16[32,784], index: 0, kind: input, shape index: {}]   ;;  %s1632_s1 = inlined_call_operand.hbm [shape: bf16[784,128], index: 1, kind: input, shape index: {}]   ;;  %s1633_s2 = inlined_call_operand.vmem [shape: f32[1,128], index: 2, kind: input, shape index: {}]   ;;  %s1634_s3 = inlined_call_operand.hbm [shape: bf16[128,128], index: 3, kind: input, shape index: {}]   ;;  %s1635_s4 = inlined_call_operand.vmem [shape: f32[1,128], index: 4, kind: input, shape index: {}]   ;;  %s1636_s5 = inlined_call_operand.hbm [shape: bf16[128,128], index: 5, kind: input, shape index: {}]   ;;  %s1637_s6 = inlined_call_operand.vmem [shape: f32[1,128], index: 6, kind: input, shape index: {}]   ;;  %s1638_s7 = inlined_call_operand.hbm [shape: f32[32,128], index: 7, kind: output, shape index: {}]  }
   0x1   :  { %13 = vsyncpa [#allocation6], 0 }
   0x2   :  { %14 = vsyncpa [#allocation9], 0 }
   0x3   :  { %15 = vsyncpa [#allocation4], 0  ;;  %s1547_s24 = smov [#allocation5]  }
   0x4   :  { %s33_s25 = sshll.u32 %s1547_s24, 4  ;;  %s34_s25 = int_to_ptr.vmem [resolvable:$true] %s33_s25 }
   0x5   :  { %s1447_s26 = scalar_lea.vmem %s34_s25, 6272  ;;  %p1452_p1 = scmp.lt.s32.totalorder %s34_s25, %s34_s25 }
   0x6   :  { %p1448_p0 = scmp.ne.s32.totalorder %s34_s25, %s1447_s26  ;;  %p1453_p2 = scmp.lt.s32.totalorder %s1447_s26, %s1447_s26 }
   0x8   :  { %p1454_p3 = por %p1453_p2, %p1452_p1 }
   0xa   :  { %p1455_p4 = pnand %p1454_p3, %p1448_p0 }
   0xc   :  { %1458 = shalt.err (!%p1455_p4)
}
   0xd   :  { %s1548_s27 = smov 64   ;;  %s1549_s28 = smov 4  }
   0xe   :  { %39 = dma.hbm_to_vmem [thread:$0]  %s1632_s1, 6272, %s34_s25, [#allocation6], %s1548_s27, %s1548_s27, %s1549_s28  }
   0xf   :  { %s1550_s8 = smov [#allocation2]  }
  0x10   :  { %s21_s9 = sshll.u32 %s1550_s8, 4  ;;  %s22_s9 = int_to_ptr.vmem [resolvable:$true] %s21_s9 }
  0x11   :  { %s1467_s10 = scalar_lea.vmem %s22_s9, 1792  ;;  %p1472_p6 = scmp.lt.s32.totalorder %s22_s9, %s22_s9 }
  0x12   :  { %p1468_p5 = scmp.ne.s32.totalorder %s22_s9, %s1467_s10  ;;  %p1473_p7 = scmp.lt.s32.totalorder %s1467_s10, %s1467_s10 }
  0x14   :  { %p1474_p8 = por %p1473_p7, %p1472_p6 }
  0x16   :  { %p1475_p9 = pnand %p1474_p8, %p1468_p5 }
  0x18   :  { %1478 = shalt.err (!%p1475_p9)
}
  0x19   :  { %s1551_s11 = smov 448   ;;  %s1552_s12 = smov 28  }
  0x1a   :  { %27 = dma.hbm_to_vmem [thread:$0]  %s1631_s0, 1792, %s22_s9, [#allocation3], %s1551_s11, %s1551_s11, %s1552_s12  }
  0x1b   :  { %s1553_s15 = smov [#allocation7]   ;;  %s1554_s17 = smov [#allocation8]  }
  0x1c   :  { %s47_s16 = sshll.u32 %s1553_s15, 4  ;;  %s61_s1 = sshll.u32 %s1554_s17, 4  ;;  %s48_s16 = int_to_ptr.vmem [resolvable:$true] %s47_s16  ;;  %s62_s1 = int_to_ptr.vmem [resolvable:$true] %s61_s1 }
  0x1d   :  { %s1487_s18 = scalar_lea.vmem %s48_s16, 1024  ;;  %p1492_p11 = scmp.lt.s32.totalorder %s48_s16, %s48_s16 }
  0x1e   :  { %p1488_p10 = scmp.ne.s32.totalorder %s48_s16, %s1487_s18  ;;  %p1493_p12 = scmp.lt.s32.totalorder %s1487_s18, %s1487_s18 }
  0x20   :  { %p1494_p13 = por %p1493_p12, %p1492_p11 }
  0x22   :  { %p1495_p0 = pnand %p1494_p13, %p1488_p10 }
  0x24   :  { %1498 = shalt.err (!%p1495_p0)
}
  0x25   :  { %53 = dma.hbm_to_vmem [thread:$0]  %s1634_s3, 1024, %s48_s16, [#allocation6], %s1548_s27, %s1548_s27, %s1549_s28  }
  0x26   :  { %s1507_s0 = scalar_lea.vmem %s62_s1, 1024  ;;  %p1512_p2 = scmp.lt.s32.totalorder %s62_s1, %s62_s1 }
  0x27   :  { %p1508_p1 = scmp.ne.s32.totalorder %s62_s1, %s1507_s0  ;;  %p1513_p3 = scmp.lt.s32.totalorder %s1507_s0, %s1507_s0 }
  0x29   :  { %p1514_p4 = por %p1513_p3, %p1512_p2 }
  0x2b   :  { %p1515_p5 = pnand %p1514_p4, %p1508_p1 }
  0x2d   :  { %1518 = shalt.err (!%p1515_p5)
}
  0x2e   :  { %67 = dma.hbm_to_vmem [thread:$0]  %s1636_s5, 1024, %s62_s1, [#allocation9], %s1548_s27, %s1548_s27, %s1549_s28  }
  0x2f   :  { %1539 = dma.done.wait [#allocation3], 1792  }
  0x30   :  { %1540 = vsyncadd [#allocation3], 4294965504 }
  0x31   :  { %1541 = dma.done.wait [#allocation6], 7296  }
  0x32   :  { %1542 = vsyncadd [#allocation6], 4294960000 }
  0x33   :  { %1543 = dma.done.wait [#allocation9], 1024  }
  0x34   :  { %1544 = vsyncadd [#allocation9], 4294966272  ;;  %v1338_v0 = vld [vmem:[#allocation5 + $0x78] sm:$0xff]   ;;  %v1342_v4 = vld [vmem:[#allocation5 + $0x70] sm:$0xff]   ;;  %vm568_vm0 = vcmask 130048  }
  0x35   :  { %v1339_v1 = vld [vmem:[#allocation5 + $0x38] sm:$0xff]   ;;  %1174 = vmatprep.subr.bf16.mxu0 %v1338_v0  ;;  %v1343_v5 = vld [vmem:[#allocation5 + $0x30] sm:$0xff]   ;;  %v1346_v8 = vld [vmem:[#allocation5 + $0x68] sm:$0xff]  }
  0x36   :  { %v1340_v2 = vld [vmem:[#allocation5 + $0xf8] sm:$0xff]   ;;  %1175 = vmatpush3.bf16.msra.mxu0 %v1339_v1  ;;  %v1344_v6 = vld [vmem:[#allocation5 + $0xf0] sm:$0xff]   ;;  %v1347_v9 = vld [vmem:[#allocation5 + $0x28] sm:$0xff]  }
  0x37   :  { %v1341_v3 = vld [vmem:[#allocation5 + $0xb8] sm:$0xff]   ;;  %1202 = vmatprep.subr.bf16.mxu1 %v1340_v2  ;;  %1176 = vmatprep.subr.bf16.mxu0 %v1342_v4  ;;  %v1345_v7 = vld [vmem:[#allocation5 + $0xb0] sm:$0xff]   ;;  %v1348_v10 = vld [vmem:[#allocation5 + $0xe8] sm:$0xff]  }
  0x38   :  { %1203 = vmatpush3.bf16.msra.mxu1 %v1341_v3  ;;  %v1349_v11 = vld [vmem:[#allocation5 + $0xa8] sm:$0xff]   ;;  %v1350_v12 = vld [vmem:[#allocation5 + $0x60] sm:$0xff]   ;;  %v1354_v16 = vld [vmem:[#allocation5 + $0x58] sm:$0xff]  }
  0x39   :  { %1204 = vmatprep.subr.bf16.mxu1 %v1344_v6  ;;  %v1351_v13 = vld [vmem:[#allocation5 + $0x20] sm:$0xff]   ;;  %v1355_v17 = vld [vmem:[#allocation5 + $0x18] sm:$0xff]   ;;  %v1358_v20 = vld [vmem:[#allocation5 + $0x50] sm:$0xff]  }
  0x3a   :  { %1177 = vmatpush3.bf16.msra.mxu0 %v1343_v5  ;;  %v1352_v14 = vld [vmem:[#allocation5 + $0xe0] sm:$0xff]   ;;  %v1356_v18 = vld [vmem:[#allocation5 + $0xd8] sm:$0xff]   ;;  %v1359_v21 = vld [vmem:[#allocation5 + $0x10] sm:$0xff]  }
  0x3b   :  { %1178 = vmatprep.subr.bf16.mxu0 %v1346_v8  ;;  %v1353_v15 = vld [vmem:[#allocation5 + $0xa0] sm:$0xff]   ;;  %v1357_v19 = vld [vmem:[#allocation5 + $0x98] sm:$0xff]   ;;  %v1360_v22 = vld [vmem:[#allocation5 + $0xd0] sm:$0xff]  }
  0x3c   :  { %1205 = vmatpush3.bf16.msra.mxu1 %v1345_v7  ;;  %v1361_v23 = vld [vmem:[#allocation5 + $0x90] sm:$0xff]   ;;  %v1362_v24 = vld [vmem:[#allocation5 + $0x48] sm:$0xff]   ;;  %v1366_v28 = vld [vmem:[#allocation5 + $0x40] sm:$0xff]  }
  0x3d   :  { %1206 = vmatprep.subr.bf16.mxu1 %v1348_v10  ;;  %v1363_v25 = vld [vmem:[#allocation5 + $0x8] sm:$0xff]   ;;  %v1367_v29 = vld [vmem:[#allocation5] sm:$0xff]   ;;  %v1371_v32 = vld [vmem:[#allocation2 + $0x4] ss:$28 sps:$4 sm:$0xff]  }
  0x3e   :  { %1179 = vmatpush3.bf16.msra.mxu0 %v1347_v9  ;;  %v1364_v26 = vld [vmem:[#allocation5 + $0xc8] sm:$0xff]   ;;  %v1368_v30 = vld [vmem:[#allocation5 + $0xc0] sm:$0xff]   ;;  %607 = vmatprep.mubr.bf16.mxu0 %v1371_v32  ;;  %v1373_v34 = vld [vmem:[#allocation5 + $0x178] sm:$0xff]  }
  0x3f   :  { %1180 = vmatprep.subr.bf16.mxu0 %v1350_v12  ;;  %v1365_v27 = vld [vmem:[#allocation5 + $0x88] sm:$0xff]   ;;  %v1372_v33 = vld [vmem:[#allocation5 + $0x80] sm:$0xff]   ;;  %v1374_v35 = vld [vmem:[#allocation2 + $0x8] ss:$28 sps:$4 sm:$0xff]  }
  0x40   :  { %1207 = vmatpush3.bf16.msra.mxu1 %v1349_v11  ;;  %v1369_v31 = vld [vmem:[#allocation2] ss:$28 sps:$4 sm:$0xff]   ;;  %v1376_v36 = vld [vmem:[#allocation2 + $0xc] ss:$28 sps:$4 sm:$0xff]   ;;  %v1382_v42 = vld [vmem:[#allocation5 + $0x160] sm:$0xff]  }
  0x41   :  { %1208 = vmatprep.subr.bf16.mxu1 %v1352_v14  ;;  %v1377_v37 = vld [vmem:[#allocation5 + $0x138] sm:$0xff]   ;;  %656 = vmatprep.mubr.bf16.mxu1 %v1376_v36  ;;  %v1378_v38 = vld [vmem:[#allocation5 + $0x170] sm:$0xff]   ;;  %v1380_v40 = vld [vmem:[#allocation5 + $0x168] sm:$0xff]  }
  0x42   :  { %1181 = vmatpush3.bf16.msra.mxu0 %v1351_v13  ;;  %v1379_v39 = vld [vmem:[#allocation5 + $0x130] sm:$0xff]   ;;  %v1381_v41 = vld [vmem:[#allocation5 + $0x128] sm:$0xff]   ;;  %v1383_v43 = vld [vmem:[#allocation5 + $0x120] sm:$0xff]  }
  0x43   :  { %1182 = vmatprep.subr.bf16.mxu0 %v1354_v16  ;;  %v1385_v44 = vld [vmem:[#allocation2 + $0x3c] ss:$28 sps:$4 sm:$0xff]   ;;  %v1384_v45 = vld [vmem:[#allocation5 + $0x158] sm:$0xff]   ;;  %v1389_v47 = vld [vmem:[#allocation2 + $0x44] ss:$28 sps:$4 sm:$0xff]  }
  0x44   :  { %1209 = vmatpush3.bf16.msra.mxu1 %v1353_v15  ;;  %v1388_v46 = vld [vmem:[#allocation2 + $0x38] ss:$28 sps:$4 sm:$0xff]   ;;  %v1391_v48 = vld [vmem:[#allocation2 + $0x40] ss:$28 sps:$4 sm:$0xff]   ;;  %v1387_v49 = vld [vmem:[#allocation5 + $0x118] sm:$0xff]  }
  0x45   :  { %1210 = vmatprep.subr.bf16.mxu1 %v1356_v18  ;;  %v1392_v50 = vld [vmem:[#allocation5 + $0x150] sm:$0xff]   ;;  %v1396_v51 = vld [vmem:[#allocation5 + $0x180] sm:$0xff]   ;;  %v1394_v53 = vld [vmem:[#allocation5 + $0x148] sm:$0xff]  }
  0x46   :  { %1183 = vmatpush3.bf16.msra.mxu0 %v1355_v17  ;;  %v1393_v52 = vld [vmem:[#allocation5 + $0x110] sm:$0xff]   ;;  %v1401_v54 = vld [vmem:[#allocation2 + $0x14] ss:$28 sps:$4 sm:$0xff]   ;;  %v1395_v57 = vld [vmem:[#allocation5 + $0x108] sm:$0xff]  }
  0x47   :  { %1184 = vmatprep.subr.bf16.mxu0 %v1358_v20  ;;  %v1402_v55 = vld [vmem:[#allocation2 + $0x18] ss:$28 sps:$4 sm:$0xff]   ;;  %v1403_v56 = vld [vmem:[#allocation2 + $0x50] ss:$28 sps:$4 sm:$0xff]   ;;  %v1406_v62 = vld [vmem:[#allocation2 + $0x48] ss:$28 sps:$4 sm:$0xff]  }
  0x48   :  { %1211 = vmatpush3.bf16.msra.mxu1 %v1357_v19  ;;  %v1397_v58 = vld [vmem:[#allocation5 + $0x140] sm:$0xff]   ;;  %v1404_v61 = vld [vmem:[#allocation2 + $0x4c] ss:$28 sps:$4 sm:$0xff]   ;;  %v1409_v1 = vld [vmem:[#allocation7 + $0x28] sm:$0xff]  }
  0x49   :  { %1212 = vmatprep.subr.bf16.mxu1 %v1360_v22  ;;  %v1398_v59 = vld [vmem:[#allocation5 + $0x100] sm:$0xff]   ;;  %v1408_v0 = vld [vmem:[#allocation7 + $0x30] sm:$0xff]   ;;  %v1410_v2 = vld [vmem:[#allocation7 + $0x20] sm:$0xff]  }
  0x4a   :  { %1185 = vmatpush3.bf16.msra.mxu0 %v1359_v21  ;;  %v1399_v60 = vld [vmem:[#allocation2 + $0x10] ss:$28 sps:$4 sm:$0xff]   ;;  %v1413_v5 = vld [vmem:[#allocation7 + $0x8] sm:$0xff]   ;;  %v1414_v6 = vld [vmem:[#allocation7] sm:$0xff]  }
  0x4b   :  { %1186 = vmatprep.subr.bf16.mxu0 %v1362_v24  ;;  %v1407_v63 = vld [vmem:[#allocation7 + $0x38] sm:$0xff]   ;;  %v1412_v4 = vld [vmem:[#allocation7 + $0x10] sm:$0xff]   ;;  %v1417_v9 = vld [vmem:[#allocation8 + $0x28] sm:$0xff]  }
  0x4c   :  { %1213 = vmatpush3.bf16.msra.mxu1 %v1361_v23  ;;  %v1411_v3 = vld [vmem:[#allocation7 + $0x18] sm:$0xff]   ;;  %v1416_v8 = vld [vmem:[#allocation8 + $0x30] sm:$0xff]   ;;  %v1418_v10 = vld [vmem:[#allocation8 + $0x20] sm:$0xff]  }
  0x4d   :  { %1214 = vmatprep.subr.bf16.mxu1 %v1364_v26  ;;  %v1415_v7 = vld [vmem:[#allocation8 + $0x38] sm:$0xff]  }
  0x4e   :  { %1187 = vmatpush3.bf16.msra.mxu0 %v1363_v25  ;;  %v1419_v11 = vld [vmem:[#allocation8 + $0x18] sm:$0xff]  }
  0x4f   :  { %1188 = vmatprep.subr.bf16.mxu0 %v1366_v28  ;;  %v1090_v28 = vld [vmem:[%s1633_s2] ss:$0 sm:$0xff] }
  0x50   :  { %1215 = vmatpush3.bf16.msra.mxu1 %v1365_v27 }
  0x51   :  { %1216 = vmatprep.subr.bf16.mxu1 %v1368_v30 }
  0x52   :  { %1189 = vmatpush3.bf16.msra.mxu0 %v1367_v29 }
  0x53   :  { %1230 = vmatprep.subr.bf16.mxu0 %v1373_v34 }
  0x54   :  { %1217 = vmatpush3.bf16.msra.mxu1 %v1372_v33 }
  0x55   :  { %608 = vmatmul.mubr.bf16.vlgmr.msra.gmra.mxu0 %v1369_v31  ;;  %1281 = vmatprep.subr.bf16.mxu1 %v1396_v51 }
  0x56   :  { %1231 = vmatpush3.bf16.msra.mxu0 %v1377_v37  ;;  %615 = vmatprep.mubr.bf16.mxu0 %v1385_v44 }
  0x57   :  { %657 = vmatmul.mubr.bf16.vlgmr.msra.gmra.mxu1 %v1374_v35  ;;  %1232 = vmatprep.subr.bf16.mxu0 %v1378_v38 }
  0x58   :  { %664 = vmatprep.mubr.bf16.mxu1 %v1389_v47  ;;  %1282 = vmatpush3.bf16.msra.mxu1 %v1396_v51 }
  0x59   :  { %1287 = vmatprep.subr.bf16.mxu1 %v1407_v63 }
  0x5a   :  { %1233 = vmatpush3.bf16.msra.mxu0 %v1379_v39 }
  0x5b   :  { %1234 = vmatprep.subr.bf16.mxu0 %v1380_v40 }
  0x5d   :  { %616 = vmatmul.mubr.bf16.gmra.mxu0 %v1388_v46 }
  0x5e   :  { %1235 = vmatpush3.bf16.msra.mxu0 %v1381_v41  ;;  %705 = vmatprep.mubr.bf16.mxu0 %v1401_v54 }
  0x5f   :  { %1236 = vmatprep.subr.bf16.mxu0 %v1382_v42  ;;  %665 = vmatmul.mubr.bf16.gmra.mxu1 %v1391_v48 }
  0x60   :  { %1283 = vmatprep.mubr.msk.bf16.mxu1 %vm568_vm0, %v1402_v55 }
  0x62   :  { %1237 = vmatpush3.bf16.msra.mxu0 %v1383_v43 }
  0x63   :  { %1238 = vmatprep.subr.bf16.mxu0 %v1384_v45 }
  0x66   :  { %1239 = vmatpush3.bf16.msra.mxu0 %v1387_v49 }
  0x67   :  { %1240 = vmatprep.subr.bf16.mxu0 %v1392_v50  ;;  %1284 = vmatmul.mubr.msk.bf16.vlgmr.msra.gmra.mxu1 %vm568_vm0, %v1403_v56 }
  0x68   :  { %1288 = vmatpush3.bf16.msra.mxu1 %v1407_v63 }
  0x69   :  { %1289 = vmatprep.subr.bf16.mxu1 %v1408_v0 }
  0x6a   :  { %1241 = vmatpush3.bf16.msra.mxu0 %v1393_v52 }
  0x6b   :  { %1242 = vmatprep.subr.bf16.mxu0 %v1394_v53 }
  0x6c   :  { %1290 = vmatpush3.bf16.msra.mxu1 %v1408_v0 }
  0x6d   :  { %1291 = vmatprep.subr.bf16.mxu1 %v1409_v1 }
  0x6e   :  { %1243 = vmatpush3.bf16.msra.mxu0 %v1395_v57 }
  0x6f   :  { %1244 = vmatprep.subr.bf16.mxu0 %v1397_v58 }
  0x70   :  { %1292 = vmatpush3.bf16.msra.mxu1 %v1409_v1 }
  0x71   :  { %1293 = vmatprep.subr.bf16.mxu1 %v1410_v2 }
  0x72   :  { %1245 = vmatpush3.bf16.msra.mxu0 %v1398_v59 }
  0x73   :  { %1307 = vmatprep.subr.bf16.mxu0 %v1415_v7 }
  0x74   :  { %1294 = vmatpush3.bf16.msra.mxu1 %v1410_v2 }
  0x75   :  { %706 = vmatmul.mubr.bf16.vlgmr.msra.gmra.mxu0 %v1399_v60  ;;  %1295 = vmatprep.subr.bf16.mxu1 %v1411_v3 }
  0x76   :  { %713 = vmatprep.mubr.bf16.mxu0 %v1404_v61  ;;  %1308 = vmatpush3.bf16.msra.mxu0 %v1415_v7 }
  0x77   :  { %1309 = vmatprep.subr.bf16.mxu0 %v1416_v8 }
  0x78   :  { %1296 = vmatpush3.bf16.msra.mxu1 %v1411_v3 }
  0x79   :  { %1297 = vmatprep.subr.bf16.mxu1 %v1412_v4 }
  0x7a   :  { %1310 = vmatpush3.bf16.msra.mxu0 %v1416_v8 }
  0x7b   :  { %1311 = vmatprep.subr.bf16.mxu0 %v1417_v9 }
  0x7c   :  { %1298 = vmatpush3.bf16.msra.mxu1 %v1412_v4 }
  0x7d   :  { %714 = vmatmul.mubr.bf16.gmra.mxu0 %v1406_v62  ;;  %1299 = vmatprep.subr.bf16.mxu1 %v1413_v5 }
  0x7e   :  { %1312 = vmatpush3.bf16.msra.mxu0 %v1417_v9 }
  0x7f   :  { %1313 = vmatprep.subr.bf16.mxu0 %v1418_v10 }
  0x80   :  { %1300 = vmatpush3.bf16.msra.mxu1 %v1413_v5 }
  0x81   :  { %1301 = vmatprep.subr.bf16.mxu1 %v1414_v6 }
  0x82   :  { %1314 = vmatpush3.bf16.msra.mxu0 %v1418_v10 }
  0x83   :  { %1315 = vmatprep.subr.bf16.mxu0 %v1419_v11 }
  0x84   :  { %1302 = vmatpush3.bf16.msra.mxu1 %v1414_v6 }
  0x86   :  { %1316 = vmatpush3.bf16.msra.mxu0 %v1419_v11  ;;  %v1420_v11 = vld [vmem:[#allocation8 + $0x10] sm:$0xff]  }
  0x87   :  { %1317 = vmatprep.subr.bf16.mxu0 %v1420_v11 }
  0x8a   :  { %1318 = vmatpush3.bf16.msra.mxu0 %v1420_v11 }
 0x115   :  { %v1190_v13 = vpop.f32.mrf.mxu0 }
 0x117   :  { %v1218_v12 = vpop.f32.mrf.mxu1  ;;  %v1191_v15 = vpop.f32.mrf.mxu0 }
 0x118   :  { %v1192_v27 = vadd.f32 %v1191_v15, %v1190_v13  ;;  %v1422_v13 = vld [vmem:[#allocation8] sm:$0xff]  }
 0x119   :  { %v1219_v14 = vpop.f32.mrf.mxu1  ;;  %v1193_v17 = vpop.f32.mrf.mxu0 }
 0x11a   :  { %v610_v31 = vadd.f32 %v1192_v27, %v1090_v28  ;;  %v1220_v32 = vadd.f32 %v1219_v14, %v1218_v12  ;;  %v1421_v12 = vld [vmem:[#allocation8 + $0x8] sm:$0xff]  }
 0x11b   :  { %v1221_v16 = vpop.f32.mrf.mxu1  ;;  %v1194_v20 = vpop.f32.mrf.mxu0  ;;  %1319 = vmatprep.subr.bf16.mxu0 %v1421_v12 }
 0x11c   :  { %v1195_v33 = vadd.f32 %v1194_v20, %v1193_v17  ;;  %v659_v38 = vadd.f32 %v1220_v32, %v610_v31  ;;  %1320 = vmatpush3.bf16.msra.mxu0 %v1421_v12 }
 0x11d   :  { %v1222_v18 = vpop.f32.mrf.mxu1  ;;  %v1196_v21 = vpop.f32.mrf.mxu0  ;;  %1321 = vmatprep.subr.bf16.mxu0 %v1422_v13 }
 0x11e   :  { %v613_v39 = vadd.f32 %v1195_v33, %v1090_v28  ;;  %v1223_v40 = vadd.f32 %v1222_v18, %v1221_v16  ;;  %v1156_v16 = vld [vmem:[%s1635_s4] ss:$0 sm:$0xff]  ;;  %s1555_s4 = smov [#allocation10]  }
 0x11f   :  { %v1224_v19 = vpop.f32.mrf.mxu1  ;;  %v1197_v23 = vpop.f32.mrf.mxu0 }
 0x120   :  { %v1198_v36 = vadd.f32 %v1197_v23, %v1196_v21  ;;  %v662_v48 = vadd.f32 %v1223_v40, %v613_v39  ;;  %1322 = vmatpush3.bf16.msra.mxu0 %v1422_v13 }
 0x121   :  { %v1225_v22 = vpop.f32.mrf.mxu1  ;;  %v1199_v25 = vpop.f32.mrf.mxu0 }
 0x122   :  { %v618_v45 = vadd.f32 %v1198_v36, %v1090_v28  ;;  %v1226_v46 = vadd.f32 %v1225_v22, %v1224_v19 }
 0x123   :  { %v1227_v24 = vpop.f32.mrf.mxu1  ;;  %v1200_v30 = vpop.f32.mrf.mxu0 }
 0x124   :  { %v1201_v49 = vadd.f32 %v1200_v30, %v1199_v25  ;;  %v667_v55 = vadd.f32 %v1226_v46, %v618_v45 }
 0x125   :  { %v1228_v26 = vpop.f32.mrf.mxu1 }
 0x126   :  { %v621_v57 = vadd.f32 %v1201_v49, %v1090_v28  ;;  %v1229_v58 = vadd.f32 %v1228_v26, %v1227_v24 }
 0x127   :  { %v1285_v29 = vpop.f32.mrf.mxu1 }
 0x128   :  { %v670_v2 = vadd.f32 %v1229_v58, %v621_v57 }
 0x129   :  { %v756_v35 = vpop.f32.mrf.mxu1 }
 0x12b   :  { %v1286_v43 = vpop.f32.mrf.mxu1 }
 0x12d   :  { %v759_v52 = vpop.f32.mrf.mxu1 }
 0x135   :  { %v1246_v34 = vpop.f32.mrf.mxu0 }
 0x137   :  { %v1247_v37 = vpop.f32.mrf.mxu0 }
 0x138   :  { %v1248_v41 = vadd.f32 %v1247_v37, %v1246_v34 }
 0x139   :  { %v1249_v42 = vpop.f32.mrf.mxu0 }
 0x13a   :  { %v708_v44 = vadd.f32 %v1248_v41, %v659_v38 }
 0x13b   :  { %v1250_v47 = vpop.f32.mrf.mxu0 }
 0x13c   :  { %v1251_v50 = vadd.f32 %v1250_v47, %v1249_v42  ;;  %v757_v53 = vadd.f32 %v756_v35, %v708_v44 }
 0x13d   :  { %v1252_v51 = vpop.f32.mrf.mxu0 }
 0x13e   :  { %v711_v54 = vadd.f32 %v1251_v50, %v662_v48  ;;  %v771_v62 = vmax.f32 %v757_v53, 0.0 }
 0x13f   :  { %v1253_v56 = vpop.f32.mrf.mxu0 }
 0x140   :  { %v1254_v59 = vadd.f32 %v1253_v56, %v1252_v51  ;;  %v760_v60 = vadd.f32 %v759_v52, %v711_v54 }
 0x141   :  { %v1255_v61 = vpop.f32.mrf.mxu0 }
 0x142   :  { %v716_v63 = vadd.f32 %v1254_v59, %v667_v55  ;;  %v772_v0 = vmax.f32 %v760_v60, 0.0 }
 0x143   :  { %v1256_v1 = vpop.f32.mrf.mxu0 }
 0x144   :  { %v775_v3 = vpack.c.bf16 %v772_v0, %v771_v62  ;;  %v1257_v4 = vadd.f32 %v1256_v1, %v1255_v61  ;;  %v765_v5 = vadd.f32 %v1285_v29, %v716_v63  ;;  %v1165_v29 = vld [vmem:[%s1637_s6] ss:$0 sm:$0xff]  ;;  %s1076_s6 = sshll.u32 %s1555_s4, 4  ;;  %s1077_s6 = int_to_ptr.vmem [resolvable:$true] %s1076_s6 }
 0x145   :  { %s1519_s26 = scalar_lea.vmem %s1077_s6, 512  ;;  %p1524_p7 = scmp.lt.s32.totalorder %s1077_s6, %s1077_s6 }
 0x146   :  { %v719_v6 = vadd.f32 %v1257_v4, %v670_v2  ;;  %1303 = vmatprep.mubr.bf16.mxu1 %v775_v3  ;;  %v773_v8 = vmax.f32 %v765_v5, 0.0  ;;  %p1520_p6 = scmp.ne.s32.totalorder %s1077_s6, %s1519_s26  ;;  %p1525_p8 = scmp.lt.s32.totalorder %s1519_s26, %s1519_s26 }
 0x148   :  { %v768_v7 = vadd.f32 %v1286_v43, %v719_v6  ;;  %p1526_p9 = por %p1525_p8, %p1524_p7 }
 0x14a   :  { %v774_v9 = vmax.f32 %v768_v7, 0.0  ;;  %p1527_p10 = pnand %p1526_p9, %p1520_p6 }
 0x14c   :  { %v776_v10 = vpack.c.bf16 %v774_v9, %v773_v8 }
 0x14e   :  { %1304 = vmatmul.mubr.bf16.vlgmr.msra.gmra.mxu1 %v776_v10 }
 0x20e   :  { %v1305_v14 = vpop.f32.mrf.mxu1 }
 0x20f   :  { %v891_v20 = vadd.f32 %v1305_v14, %v1156_v16 }
 0x210   :  { %v882_v15 = vpop.f32.mrf.mxu1 }
 0x211   :  { %v883_v18 = vadd.f32 %v1156_v16, %v882_v15  ;;  %v899_v26 = vmax.f32 %v891_v20, 0.0 }
 0x212   :  { %v1306_v17 = vpop.f32.mrf.mxu1 }
 0x213   :  { %v894_v19 = vadd.f32 %v1306_v17, %v1156_v16  ;;  %v897_v24 = vmax.f32 %v883_v18, 0.0 }
 0x214   :  { %v885_v21 = vpop.f32.mrf.mxu1 }
 0x215   :  { %v886_v22 = vadd.f32 %v1156_v16, %v885_v21  ;;  %v900_v23 = vmax.f32 %v894_v19, 0.0 }
 0x217   :  { %v898_v25 = vmax.f32 %v886_v22, 0.0  ;;  %v902_v28 = vpack.c.bf16 %v900_v23, %v899_v26 }
 0x219   :  { %v901_v27 = vpack.c.bf16 %v898_v25, %v897_v24 }
 0x21b   :  { %1323 = vmatprep.mubr.bf16.mxu0 %v901_v27 }
 0x21c   :  { %1324 = vmatmul.mubr.bf16.vlgmr.msra.gmra.mxu0 %v902_v28 }
 0x2dc   :  { %v1325_v30 = vpop.f32.mrf.mxu0 }
 0x2dd   :  { %v1017_v31 = vadd.f32 %v1325_v30, %v1165_v29 }
 0x2de   :  { %v1008_v32 = vpop.f32.mrf.mxu0 }
 0x2df   :  { %v1009_v33 = vadd.f32 %v1165_v29, %v1008_v32  ;;  %1027 = vmax.xlane.f32.xlu1 %v1017_v31 }
 0x2e0   :  { %v1326_v34 = vpop.f32.mrf.mxu0 }
 0x2e1   :  { %v1020_v35 = vadd.f32 %v1326_v34, %v1165_v29  ;;  %1023 = vmax.xlane.f32.xlu0 %v1009_v33 }
 0x2e2   :  { %v1011_v36 = vpop.f32.mrf.mxu0 }
 0x2e3   :  { %v1012_v37 = vadd.f32 %v1165_v29, %v1011_v36  ;;  %1029 = vmax.xlane.f32.xlu1 %v1020_v35 }
 0x2e5   :  { %1025 = vmax.xlane.f32.xlu0 %v1012_v37 }
 0x368   :  { %v1028_v38 = vpop.xlane.xlu1 %1027 }
 0x369   :  { %v1033_v39 = vsub.f32 %v1017_v31, %v1028_v38 }
 0x36a   :  { %v1024_v40 = vpop.xlane.xlu0 %1023 }
 0x36b   :  { %v1031_v41 = vsub.f32 %v1009_v33, %v1024_v40  ;;  %v1039_v44 = vmul.f32 1.442695, %v1033_v39 }
 0x36c   :  { %v1030_v42 = vpop.xlane.xlu1 %1029 }
 0x36d   :  { %v1035_v43 = vmul.f32 1.442695, %v1031_v41  ;;  %v1034_v46 = vsub.f32 %v1020_v35, %v1030_v42 }
 0x36e   :  { %v1026_v45 = vpop.xlane.xlu0 %1025 }
 0x36f   :  { %1423 = vpow2.f32 %v1035_v43  ;;  %v1032_v47 = vsub.f32 %v1012_v37, %v1026_v45  ;;  %v1041_v49 = vmul.f32 1.442695, %v1034_v46 }
 0x370   :  { %1425 = vpow2.f32 %v1039_v44 }
 0x371   :  { %v1037_v48 = vmul.f32 1.442695, %v1032_v47 }
 0x373   :  { %1427 = vpow2.f32 %v1037_v48 }
 0x374   :  { %1429 = vpow2.f32 %v1041_v49 }
 0x37c   :  { %v1424_v50 = vpop.eup %1423 }
 0x37d   :  { %1043 = vadd.xlane.f32.xlu0 %v1424_v50  ;;  %v1426_v51 = vpop.eup %1425 }
 0x380   :  { %v1428_v52 = vpop.eup %1427 }
 0x381   :  { %1047 = vadd.xlane.f32.xlu0 %v1426_v51  ;;  %1045 = vadd.xlane.f32.xlu1 %v1428_v52  ;;  %v1430_v53 = vpop.eup %1429 }
 0x385   :  { %1049 = vadd.xlane.f32.xlu1 %v1430_v53 }
 0x406   :  { %v1044_v54 = vpop.xlane.xlu0 %1043 }
 0x407   :  { %1431 = vlog2.f32 %v1044_v54 }
 0x40a   :  { %v1046_v55 = vpop.xlane.xlu1 %1045  ;;  %v1048_v56 = vpop.xlane.xlu0 %1047 }
 0x40b   :  { %1433 = vlog2.f32 %v1046_v55 }
 0x40c   :  { %1435 = vlog2.f32 %v1048_v56 }
 0x40e   :  { %v1050_v57 = vpop.xlane.xlu1 %1049 }
 0x40f   :  { %1437 = vlog2.f32 %v1050_v57 }
 0x414   :  { %v1432_v58 = vpop.eup %1431 }
 0x415   :  { %v1052_v59 = vmul.f32 0.6931472, %v1432_v58 }
 0x417   :  { %v1059_v60 = vadd.f32 %v1052_v59, %v1024_v40 }
 0x418   :  { %v1434_v61 = vpop.eup %1433 }
 0x419   :  { %v1436_v62 = vpop.eup %1435  ;;  %v1063_v63 = vsub.f32 %v1009_v33, %v1059_v60  ;;  %v1054_v0 = vmul.f32 0.6931472, %v1434_v61 }
 0x41a   :  { %v1056_v1 = vmul.f32 0.6931472, %v1436_v62 }
 0x41b   :  { %1067 = vst [vmem:[#allocation10] sm:$0xff] %v1063_v63  ;;  %v1060_v2 = vadd.f32 %v1054_v0, %v1026_v45 }
 0x41c   :  { %v1438_v3 = vpop.eup %1437  ;;  %v1061_v4 = vadd.f32 %v1056_v1, %v1028_v38 }
 0x41d   :  { %v1064_v5 = vsub.f32 %v1012_v37, %v1060_v2  ;;  %v1058_v6 = vmul.f32 0.6931472, %v1438_v3 }
 0x41e   :  { %v1065_v7 = vsub.f32 %v1017_v31, %v1061_v4 }
 0x41f   :  { %1068 = vst [vmem:[#allocation10 + $0x8] sm:$0xff] %v1064_v5  ;;  %v1062_v8 = vadd.f32 %v1058_v6, %v1030_v42 }
 0x420   :  { %1069 = vst [vmem:[#allocation10 + $0x10] sm:$0xff] %v1065_v7 }
 0x421   :  { %v1066_v9 = vsub.f32 %v1020_v35, %v1062_v8 }
 0x423   :  { %1070 = vst [vmem:[#allocation10 + $0x18] sm:$0xff] %v1066_v9 }
 0x424   :  { %1530 = shalt.err (!%p1527_p10)
}
 0x425   :  { %s1556_s27 = smov 128   ;;  %s1557_s28 = smov 8  }
 0x426   :  { %1082 = dma.vmem_to_hbm [thread:$0]  %s1077_s6, 512, %s1638_s7, [#allocation4], %s1556_s27, %s1556_s27, %s1557_s28  }
 0x427   :  { %1545 = dma.done.wait [#allocation4], 512  }
 0x428   :  { %1546 = vsyncadd [#allocation4], 4294966784 }
 0x429   :  { %1086 = vsyncpa [#allocation3], 1 }
 0x42a   :  { %1087 = vsyncpa [#allocation6], 1 }
 0x42b   :  { %1088 = vsyncpa [#allocation9], 1 }
 0x42c   :  { %1089 = vsyncpa [#allocation4], 1 }

</bundles_post_ra>
